<compile_context>
chip_gen: v5e
topology: v5e:2x2
jax: 0.10.0
libtpu: 0.0.40
codegen_flags: <defaults>
</compile_context>

<pallas_src>
import functools

import jax
import jax.numpy as jnp
from jax import lax
from jax.experimental import pallas as pl
from jax.experimental.pallas import tpu as pltpu

_LANES = 128
_TARGET_BLOCK_BYTES = 2 * 1024 * 1024   # ~2 MiB input block: HBM-roofline sweet spot
_VMEM_LIMIT_BYTES = 32 * 1024 * 1024    # safe headroom on v5e/v6e (128 MiB) and v7x (64 MiB)


# ---------------------------------------------------------------------------
# small helpers
# ---------------------------------------------------------------------------
def _cdiv(a, b):
    return -(-a // b)


def _round_up(a, b):
    return _cdiv(a, b) * b


def _pick_tile(n_units, unit_bytes, align, prefer_even=True):
    """Largest `align`-multiple tile with tile*unit_bytes <= ~2 MiB, capped at
    the (aligned) extent.  Best-effort even grid-step count (v7x dual-TC)."""
    t = max(align, (_TARGET_BLOCK_BYTES // max(unit_bytes, 1)) // align * align)
    t = min(t, _round_up(n_units, align))
    if prefer_even:
        steps = _cdiv(n_units, t)
        if steps > 1 and steps % 2 == 1:
            t2 = _round_up(_cdiv(n_units, steps + 1), align)
            if t2 >= align:
                t = t2
    return t


# ---------------------------------------------------------------------------
# kernels
# ---------------------------------------------------------------------------
def _ln_rows_kernel(x_ref, w_ref, b_ref, o_ref, *, eps):
    # x_ref: (T, C) with the normalized/channel axis on lanes.
    x = x_ref[...].astype(jnp.float32)
    u = jnp.mean(x, axis=-1, keepdims=True)
    d = x - u
    s = jnp.mean(d * d, axis=-1, keepdims=True)
    y = d * lax.rsqrt(s + eps)
    o_ref[...] = (y * w_ref[...] + b_ref[...]).astype(o_ref.dtype)


def _ln_packed_kernel(x_ref, w_ref, b_ref, g_ref, o_ref, *, eps):
    # x_ref: (T, 128) -- each row holds 128//C independent channel groups.
    # g_ref: (128, 128) block-diagonal matrix whose diagonal blocks hold 1/C
    # (power of two -> exact), so one MXU pass yields each group's mean already
    # broadcast to its lanes.  HIGHEST precision keeps the f32 sums exact.
    # TODO(synk): on v5e the two HIGHEST f32 matmuls (~6 bf16 passes each) can
    # bind before HBM; an XLU roll-based segmented lane reduce would fix that
    # but needs on-chip validation of the roll direction, so it is left out.
    x = x_ref[...].astype(jnp.float32)
    g = g_ref[...]
    u = jnp.dot(x, g, precision=lax.Precision.HIGHEST,
                preferred_element_type=jnp.float32)
    d = x - u
    s = jnp.dot(d * d, g, precision=lax.Precision.HIGHEST,
                preferred_element_type=jnp.float32)
    y = d * lax.rsqrt(s + eps)
    o_ref[...] = (y * w_ref[...] + b_ref[...]).astype(o_ref.dtype)


def _ln_cf_kernel(x_ref, w_ref, b_ref, o_ref, *, eps):
    # x_ref: (1, C, T) -- NCHW handled natively: channels on sublanes
    # (cross-sublane reduce), spatial lane-dense.  w/b are pre-broadcast to
    # (1, C, T) so no per-step lane broadcast is needed.
    x = x_ref[...].astype(jnp.float32)
    u = jnp.mean(x, axis=1, keepdims=True)
    d = x - u
    s = jnp.mean(d * d, axis=1, keepdims=True)
    y = d * lax.rsqrt(s + eps)
    o_ref[...] = (y * w_ref[...] + b_ref[...]).astype(o_ref.dtype)


# ---------------------------------------------------------------------------
# drivers (run under jax.jit; all reshapes here are layout-preserving bitcasts)
# ---------------------------------------------------------------------------
def _layernorm_channels_last(x, weight, bias, eps):
    orig_shape = x.shape
    C = orig_shape[-1]
    x2d = x.reshape(-1, C)
    R = x2d.shape[0]
    itemsize = x2d.dtype.itemsize
    sub_align = max(8, 32 // itemsize)  # (8,128) f32 / (16,128) bf16 / (32,128) i8
    total = R * C

    if C < _LANES and _LANES % C == 0 and total % _LANES == 0:
        # ---- small-C fast path: lane-dense repack (free reshape), MXU reduce.
        n_rows = total // _LANES
        tile = _pick_tile(n_rows, _LANES * itemsize, sub_align)
        xp = x2d.reshape(n_rows, _LANES)

        reps = _LANES // C
        w_p = jnp.tile(weight.astype(jnp.float32), reps).reshape(1, _LANES)
        b_p = jnp.tile(bias.astype(jnp.float32), reps).reshape(1, _LANES)
        idx = jnp.arange(_LANES)
        gmat = (idx[:, None] // C == idx[None, :] // C).astype(jnp.float32) * (1.0 / C)

        out = pl.pallas_call(
            functools.partial(_ln_packed_kernel, eps=eps),
            out_shape=jax.ShapeDtypeStruct((n_rows, _LANES), x2d.dtype),
            grid=(pl.cdiv(n_rows, tile),),
            in_specs=[
                pl.BlockSpec((tile, _LANES), lambda i: (i, 0)),
                pl.BlockSpec((1, _LANES), lambda i: (0, 0)),
                pl.BlockSpec((1, _LANES), lambda i: (0, 0)),
                pl.BlockSpec((_LANES, _LANES), lambda i: (0, 0)),
            ],
            out_specs=pl.BlockSpec((tile, _LANES), lambda i: (i, 0)),
            compiler_params=pltpu.CompilerParams(
                dimension_semantics=("parallel",),
                vmem_limit_bytes=_VMEM_LIMIT_BYTES),
        )(xp, w_p, b_p, gmat)
        return out.reshape(orig_shape)

    # ---- generic path: C already sits on lanes (>=128, ragged, or tail cases)
    unit_bytes = _round_up(C, _LANES) * itemsize   # physical lane-padded row bytes
    tile = _pick_tile(R, unit_bytes, sub_align)
    out = pl.pallas_call(
        functools.partial(_ln_rows_kernel, eps=eps),
        out_shape=jax.ShapeDtypeStruct((R, C), x2d.dtype),
        grid=(pl.cdiv(R, tile),),
        in_specs=[
            pl.BlockSpec((tile, C), lambda i: (i, 0)),
            pl.BlockSpec((1, C), lambda i: (0, 0)),
            pl.BlockSpec((1, C), lambda i: (0, 0)),
        ],
        out_specs=pl.BlockSpec((tile, C), lambda i: (i, 0)),
        compiler_params=pltpu.CompilerParams(
            dimension_semantics=("parallel",),
            vmem_limit_bytes=_VMEM_LIMIT_BYTES),
    )(x2d, weight.reshape(1, C).astype(jnp.float32),
      bias.reshape(1, C).astype(jnp.float32))
    return out.reshape(orig_shape)


def _layernorm_channels_first(x, weight, bias, eps):
    """LayerNorm over axis 1 of an NCHW tensor, no transposes, no padding."""
    N, C, H, W = x.shape
    HW = H * W
    itemsize = x.dtype.itemsize
    sub_align = max(8, 32 // itemsize)
    phys_c = _round_up(C, sub_align)                 # sublane-padded channel count
    tile = _pick_tile(HW, phys_c * itemsize, _LANES, prefer_even=(N % 2 == 1))
    if tile >= HW:
        tile = HW                                    # full spatial extent (always legal)

    x3 = x.reshape(N, C, HW)
    w_b = jnp.broadcast_to(weight.astype(jnp.float32).reshape(1, C, 1), (1, C, tile))
    b_b = jnp.broadcast_to(bias.astype(jnp.float32).reshape(1, C, 1), (1, C, tile))

    out = pl.pallas_call(
        functools.partial(_ln_cf_kernel, eps=eps),
        out_shape=jax.ShapeDtypeStruct((N, C, HW), x.dtype),
        grid=(N, pl.cdiv(HW, tile)),
        in_specs=[
            pl.BlockSpec((1, C, tile), lambda n, s: (n, 0, s)),
            pl.BlockSpec((1, C, tile), lambda n, s: (0, 0, 0)),
            pl.BlockSpec((1, C, tile), lambda n, s: (0, 0, 0)),
        ],
        out_specs=pl.BlockSpec((1, C, tile), lambda n, s: (n, 0, s)),
        compiler_params=pltpu.CompilerParams(
            dimension_semantics=("parallel", "parallel"),
            vmem_limit_bytes=_VMEM_LIMIT_BYTES),
    )(x3, w_b, b_b)
    return out.reshape(N, C, H, W)


# ---------------------------------------------------------------------------
# module
# ---------------------------------------------------------------------------
class LayerNorm:
    """JAX/Pallas port of the PyTorch LayerNorm module (ConvNeXt-style, eps=1e-6)."""

    def __init__(self, normalized_shape, eps=1e-6, data_format="channels_last"):
        if data_format not in ("channels_last", "channels_first"):
            raise NotImplementedError
        self.weight = jnp.ones((normalized_shape,), jnp.float32)
        self.bias = jnp.zeros((normalized_shape,), jnp.float32)
        self.eps = eps
        self.data_format = data_format
        self.normalized_shape = (normalized_shape,)
        fn = (_layernorm_channels_last if data_format == "channels_last"
              else _layernorm_channels_first)
        # Whole driver under one jit: param tiling / gmat / reshapes fuse or
        # constant-fold around the pallas_call.
        self._fn = jax.jit(functools.partial(fn, eps=eps))

    def __call__(self, x):
        if self.data_format == "channels_last":
            assert x.shape[-1] == self.normalized_shape[0]
        else:
            assert x.ndim == 4 and x.shape[1] == self.normalized_shape[0]
        return self._fn(x, self.weight, self.bias)


# ---------------------------------------------------------------------------
# reference + self-test
# ---------------------------------------------------------------------------
def _reference(x, weight, bias, eps, data_format):
    if data_format == "channels_last":
        u = jnp.mean(x, axis=-1, keepdims=True)
        s = jnp.mean((x - u) ** 2, axis=-1, keepdims=True)
        return (x - u) / jnp.sqrt(s + eps) * weight + bias
    else:
        u = jnp.mean(x, axis=1, keepdims=True)
        s = jnp.mean((x - u) ** 2, axis=1, keepdims=True)
        xn = (x - u) / jnp.sqrt(s + eps)
        return weight[:, None, None] * xn + bias[:, None, None]


if __name__ == "__main__":
    key = jax.random.PRNGKey(0)
    k1, k2, k3, k4, k5, k6, k7 = jax.random.split(key, 7)
    eps = 1e-6

    # ---- channels_first: x = (N, C, H, W) = (2, 4, 16, 16) ------------------
    C = 4
    w = 1.0 + 0.1 * jax.random.normal(k3, (C,), jnp.float32)
    b = 0.1 * jax.random.normal(k4, (C,), jnp.float32)
    x_cf = jax.random.normal(k1, (2, C, 16, 16), jnp.float32)
    ln_cf = LayerNorm(C, eps=eps, data_format="channels_first")
    ln_cf.weight, ln_cf.bias = w, b
    y_cf = jax.block_until_ready(ln_cf(x_cf))
    ref_cf = _reference(x_cf, w, b, eps, "channels_first")
    assert y_cf.shape == x_cf.shape
    assert jnp.allclose(y_cf, ref_cf, atol=5e-5, rtol=5e-5)

    # ---- channels_last, small-C packed path: x = (2, 16, 16, 4) -------------
    x_cl = jax.random.normal(k2, (2, 16, 16, C), jnp.float32)
    ln_cl = LayerNorm(C, eps=eps, data_format="channels_last")
    ln_cl.weight, ln_cl.bias = w, b
    y_cl = jax.block_until_ready(ln_cl(x_cl))
    ref_cl = _reference(x_cl, w, b, eps, "channels_last")
    assert y_cl.shape == x_cl.shape
    assert jnp.allclose(y_cl, ref_cl, atol=5e-5, rtol=5e-5)

    # ---- channels_last, generic path with a ragged row count (partial block)
    C2 = 32
    w2 = 1.0 + 0.1 * jax.random.normal(k6, (C2,), jnp.float32)
    b2 = 0.1 * jax.random.normal(k7, (C2,), jnp.float32)
    x_g = jax.random.normal(k5, (2, 3, 5, C2), jnp.float32)   # rows = 30 (not /8)
    ln_g = LayerNorm(C2, eps=eps, data_format="channels_last")
    ln_g.weight, ln_g.bias = w2, b2
    y_g = jax.block_until_ready(ln_g(x_g))
    ref_g = _reference(x_g, w2, b2, eps, "channels_last")
    assert y_g.shape == x_g.shape
    assert jnp.allclose(y_g, ref_g, atol=5e-5, rtol=5e-5)

    print("KERNEL_OK")
</pallas_src>

<mosaic_0001>
module attributes {stable_mosaic.version = 11 : i64} {
  func.func @_ln_cf_kernel(%arg0: i32, %arg1: i32, %arg2: memref<1x4x256xf32, #tpu.memory_space<vmem>>, %arg3: memref<1x4x256xf32, #tpu.memory_space<vmem>>, %arg4: memref<1x4x256xf32, #tpu.memory_space<vmem>>, %arg5: memref<1x4x256xf32, #tpu.memory_space<vmem>>) attributes {dimension_semantics = [#tpu.dimension_semantics<parallel>, #tpu.dimension_semantics<parallel>], iteration_bounds = array<i64: 2, 1>, scalar_prefetch = 0 : i64, scratch_operands = 0 : i64, tpu.core_type = #tpu.core_type<tc>, window_params = [{transform_indices = @transform_0, window_bounds = array<i64: 1, 4, 256>}, {pipeline_mode = #tpu.pipeline_mode<synchronous>, transform_indices = @transform_1, window_bounds = array<i64: 1, 4, 256>}, {pipeline_mode = #tpu.pipeline_mode<synchronous>, transform_indices = @transform_2, window_bounds = array<i64: 1, 4, 256>}, {transform_indices = @transform_3, window_bounds = array<i64: 1, 4, 256>}]} {
    %c0 = arith.constant 0 : index
    %c0_0 = arith.constant 0 : index
    %c0_1 = arith.constant 0 : index
    %0 = vector.load %arg2[%c0, %c0_0, %c0_1] : memref<1x4x256xf32, #tpu.memory_space<vmem>>, vector<1x4x256xf32>
    %cst = arith.constant dense<0.000000e+00> : vector<1x256xf32>
    %1 = vector.multi_reduction <add>, %0, %cst [1] : vector<1x4x256xf32> to vector<1x256xf32>
    %2 = vector.shape_cast %1 : vector<1x256xf32> to vector<1x1x256xf32>
    %cst_2 = arith.constant 4.000000e+00 : f32
    %3 = vector.broadcast %cst_2 : f32 to vector<1x1x256xf32>
    %4 = arith.divf %2, %3 : vector<1x1x256xf32>
    %5 = vector.broadcast %4 : vector<1x1x256xf32> to vector<1x4x256xf32>
    %6 = arith.subf %0, %5 : vector<1x4x256xf32>
    %7 = arith.mulf %6, %6 : vector<1x4x256xf32>
    %cst_3 = arith.constant dense<0.000000e+00> : vector<1x256xf32>
    %8 = vector.multi_reduction <add>, %7, %cst_3 [1] : vector<1x4x256xf32> to vector<1x256xf32>
    %9 = vector.shape_cast %8 : vector<1x256xf32> to vector<1x1x256xf32>
    %cst_4 = arith.constant 4.000000e+00 : f32
    %10 = vector.broadcast %cst_4 : f32 to vector<1x1x256xf32>
    %11 = arith.divf %9, %10 : vector<1x1x256xf32>
    %cst_5 = arith.constant 9.99999997E-7 : f32
    %12 = vector.broadcast %cst_5 : f32 to vector<1x1x256xf32>
    %13 = arith.addf %11, %12 : vector<1x1x256xf32>
    %14 = math.rsqrt %13 : vector<1x1x256xf32>
    %15 = vector.broadcast %14 : vector<1x1x256xf32> to vector<1x4x256xf32>
    %16 = arith.mulf %6, %15 : vector<1x4x256xf32>
    %c0_6 = arith.constant 0 : index
    %c0_7 = arith.constant 0 : index
    %c0_8 = arith.constant 0 : index
    %17 = vector.load %arg3[%c0_6, %c0_7, %c0_8] : memref<1x4x256xf32, #tpu.memory_space<vmem>>, vector<1x4x256xf32>
    %18 = arith.mulf %16, %17 : vector<1x4x256xf32>
    %c0_9 = arith.constant 0 : index
    %c0_10 = arith.constant 0 : index
    %c0_11 = arith.constant 0 : index
    %19 = vector.load %arg4[%c0_9, %c0_10, %c0_11] : memref<1x4x256xf32, #tpu.memory_space<vmem>>, vector<1x4x256xf32>
    %20 = arith.addf %18, %19 : vector<1x4x256xf32>
    %c0_12 = arith.constant 0 : index
    %c0_13 = arith.constant 0 : index
    %c0_14 = arith.constant 0 : index
    %21 = vector.load %arg5[%c0_12, %c0_13, %c0_14] : memref<1x4x256xf32, #tpu.memory_space<vmem>>, vector<1x4x256xf32>
    tpu.vector_store %arg5[%c0_12, %c0_13, %c0_14], %20 {strides = array<i32>} : memref<1x4x256xf32, #tpu.memory_space<vmem>>, vector<1x4x256xf32>,
    return
  }
  func.func @transform_0(%arg0: i32, %arg1: i32) -> (i32, i32, i32) {
    %c0_i32 = arith.constant 0 : i32
    %c0_i32_0 = arith.constant 0 : i32
    return %arg0, %c0_i32, %arg1 : i32, i32, i32
  }
  func.func @transform_1(%arg0: i32, %arg1: i32) -> (i32, i32, i32) {
    %c0_i32 = arith.constant 0 : i32
    %c0_i32_0 = arith.constant 0 : i32
    %c0_i32_1 = arith.constant 0 : i32
    %c0_i32_2 = arith.constant 0 : i32
    return %c0_i32, %c0_i32_0, %c0_i32_1 : i32, i32, i32
  }
  func.func @transform_2(%arg0: i32, %arg1: i32) -> (i32, i32, i32) {
    %c0_i32 = arith.constant 0 : i32
    %c0_i32_0 = arith.constant 0 : i32
    %c0_i32_1 = arith.constant 0 : i32
    %c0_i32_2 = arith.constant 0 : i32
    return %c0_i32, %c0_i32_0, %c0_i32_1 : i32, i32, i32
  }
  func.func @transform_3(%arg0: i32, %arg1: i32) -> (i32, i32, i32) {
    %c0_i32 = arith.constant 0 : i32
    %c0_i32_0 = arith.constant 0 : i32
    return %arg0, %c0_i32, %arg1 : i32, i32, i32
  }
}

</mosaic_0001>

<bundles_post_ra>
// kernel: _layernorm_channels_first.1
= control target key start
LH: loop header
LB: loop body
LE: loop exit
PB: predicated region body
PF: predicated region fallthrough
CT: control target
= control target key end

     0   :  { %s479_s12 = smov 0   ;;  %s481_s13 = smov 0   ;;  %s531_s0 = inlined_call_operand.vmem [shape: f32[2,4,256], index: 0, kind: input, shape index: {}]   ;;  %s532_s1 = inlined_call_operand.vmem [shape: f32[1,4,256], index: 1, kind: input, shape index: {}]   ;;  %s533_s2 = inlined_call_operand.vmem [shape: f32[1,4,256], index: 2, kind: input, shape index: {}]   ;;  %s534_s3 = inlined_call_operand.vmem [shape: f32[2,4,256], index: 3, kind: output, shape index: {}]  }
   0x1   :  { %s483_s14 = smov 0  }
   0x2 LB: > { %s25_s15 = sadd.s32 1, %s452_s13  ;;  %p394_p0 = scmp.ge.s32.totalorder %s456_s14, 1  ;;  %s456_s14 = sphi %s483_s14, %s13_s14   ;;  %s452_s13 = sphi %s481_s13, %s536_s13   ;;  %s448_s12 = sphi %s479_s12, %s535_s12  }
   0x3   : > { %p27_p1 = scmp.ge.s32.totalorder %s25_s15, 2  ;;  %p158_p2 = scmp.lt.s32.totalorder %s456_s14, 3 }
   0x5   : > { %s538_s15 = smov (%p27_p1, %s25_s15), 0  ;;  %p159_p3 = pnand %p394_p0, %p158_p2 }
   0x6   : > { %p191_p4 = scmp.lt.s32.totalorder (!%p159_p3), %s448_s12, 1 }
   0x7   : > { %162 = sbr.rel (%p159_p3) target bundleno = 100 (0x64), region = 32 }
   0xc   : > { %v458_v0 = vmov 4.0   ;;  %s540_s12 = smov (!%p191_p4, %s448_s12), 1  ;;  %vm217_vm0 = vcmask 1043456  }
   0xd   : > { %428 = vrcp.f32 %v458_v0  ;;  %s401_s16 = sshll.u32 %s540_s12, 3 }
   0xe   : > { %s198_s19 = scalar_lea.vmem %s531_s0, %s401_s16  ;;  %s208_s26 = scalar_lea.vmem %s534_s3, %s401_s16 }
   0xf   : > { %v210_v1 = vld [vmem:[%s198_s19] sm:$0xff] }
  0x10   : > { %212 = vst [vmem:[#allocation1] ss:$2 sm:$0xff] %v210_v1 }
  0x13   : > { %v429_v2 = vpop.eup %428 }
  0x14   : > { %v233_v3 = vmul.f32 4.0, %v429_v2  ;;  %vm237_vm1 = vweird.f32 %v429_v2 }
  0x16   : > { %v234_v4 = vsub.f32 1.0, %v233_v3 }
  0x17   : > { %v213_v5 = vld.sshfl [vmem:[#allocation1] sm:$0xff pattern:$0x75316420]  ;;  %v214_v6 = vld.sshfl [vmem:[#allocation1 + $0x8] sm:$0xff pattern:$0x75316420] }
  0x18   : > { %v218_v7 = vsel %vm217_vm0, %v213_v5, 0.0  ;;  %v225_v8 = vsel %vm217_vm0, %v214_v6, 0.0  ;;  %v235_v11 = vmul.f32 %v429_v2, %v234_v4  ;;  %v300_v4 = vld [vmem:[%s533_s2] sm:$0xff] }
  0x19   : > { %v219_v9 = vrot.slane %v218_v7, 4  ;;  %v226_v10 = vrot.slane %v225_v8, 4 }
  0x1a   : > { %v236_v16 = vadd.f32 %v429_v2, %v235_v11 }
  0x1b   : > { %v220_v12 = vadd.f32 %v219_v9, %v218_v7  ;;  %v227_v13 = vadd.f32 %v226_v10, %v225_v8 }
  0x1c   : > { %v238_v21 = vsel %vm237_vm1, %v429_v2, %v236_v16  ;;  %v298_v2 = vld [vmem:[%s532_s1] sm:$0xff] }
  0x1d   : > { %v221_v14 = vrot.slane %v220_v12, 2  ;;  %v228_v15 = vrot.slane %v227_v13, 2 }
  0x1f   : > { %v222_v17 = vadd.f32 %v221_v14, %v220_v12  ;;  %v229_v18 = vadd.f32 %v228_v15, %v227_v13 }
  0x21   : > { %v223_v19 = vrot.slane %v222_v17, 1  ;;  %v230_v20 = vrot.slane %v229_v18, 1 }
  0x23   : > { %v224_v22 = vadd.f32 %v223_v19, %v222_v17  ;;  %v231_v23 = vadd.f32 %v230_v20, %v229_v18 }
  0x25   : > { %v240_v24 = vmul.f32 %v238_v21, %v231_v23  ;;  %v239_v25 = vmul.f32 %v238_v21, %v224_v22 }
  0x27   : > { %v243_v26 = vrot.slane %v240_v24, 4 }
  0x29   : > { %v244_v27 = vsel %vm217_vm0, %v239_v25, %v243_v26 }
  0x2a   : > { %v246_v28 = vsub.f32 %v210_v1, %v244_v27 }
  0x2c   : > { %v247_v29 = vmul.f32 %v246_v28, %v246_v28 }
  0x2e   : > { %249 = vst [vmem:[#allocation1] ss:$2 sm:$0xff] %v247_v29 }
  0x35   : > { %v250_v30 = vld.sshfl [vmem:[#allocation1] sm:$0xff pattern:$0x75316420]  ;;  %v251_v31 = vld.sshfl [vmem:[#allocation1 + $0x8] sm:$0xff pattern:$0x75316420] }
  0x36   : > { %v254_v32 = vsel %vm217_vm0, %v250_v30, 0.0  ;;  %v261_v33 = vsel %vm217_vm0, %v251_v31, 0.0 }
  0x37   : > { %v255_v34 = vrot.slane %v254_v32, 4  ;;  %v262_v35 = vrot.slane %v261_v33, 4 }
  0x39   : > { %v256_v36 = vadd.f32 %v255_v34, %v254_v32  ;;  %v263_v37 = vadd.f32 %v262_v35, %v261_v33 }
  0x3b   : > { %v257_v38 = vrot.slane %v256_v36, 2  ;;  %v264_v39 = vrot.slane %v263_v37, 2 }
  0x3d   : > { %v258_v40 = vadd.f32 %v257_v38, %v256_v36  ;;  %v265_v41 = vadd.f32 %v264_v39, %v263_v37 }
  0x3f   : > { %v259_v42 = vrot.slane %v258_v40, 1  ;;  %v266_v43 = vrot.slane %v265_v41, 1 }
  0x41   : > { %v260_v44 = vadd.f32 %v259_v42, %v258_v40  ;;  %v267_v45 = vadd.f32 %v266_v43, %v265_v41 }
  0x43   : > { %v268_v46 = vmul.f32 %v260_v44, %v238_v21  ;;  %v269_v47 = vmul.f32 %v267_v45, %v238_v21 }
  0x45   : > { %v270_v48 = vadd.f32 1e-06, %v268_v46  ;;  %v271_v49 = vadd.f32 1e-06, %v269_v47 }
  0x47   : > { %430 = vrsqrt.f32 %v270_v48  ;;  %vm288_vm4 = vweird.f32 %v271_v49  ;;  %vm278_vm6 = vweird.f32 %v270_v48 }
  0x48   : > { %432 = vrsqrt.f32 %v271_v49 }
  0x4d   : > { %v431_v50 = vpop.eup %430 }
  0x4e   : > { %v433_v51 = vpop.eup %432  ;;  %v273_v52 = vmul.f32 %v431_v50, %v270_v48  ;;  %vm279_vm3 = vweird.f32 %v431_v50 }
  0x4f   : > { %v283_v53 = vmul.f32 %v433_v51, %v271_v49  ;;  %vm289_vm2 = vweird.f32 %v433_v51  ;;  %vm280_vm7 = vmor %vm278_vm6, %vm279_vm3 }
  0x50   : > { %v274_v54 = vmul.f32 %v431_v50, %v273_v52  ;;  %vm290_vm5 = vmor %vm288_vm4, %vm289_vm2 }
  0x51   : > { %v284_v55 = vmul.f32 %v433_v51, %v283_v53 }
  0x52   : > { %v275_v56 = vmul.f32 0.5, %v274_v54 }
  0x53   : > { %v285_v57 = vmul.f32 0.5, %v284_v55 }
  0x54   : > { %v276_v58 = vsub.f32 1.5, %v275_v56 }
  0x55   : > { %v286_v59 = vsub.f32 1.5, %v285_v57 }
  0x56   : > { %v277_v60 = vmul.f32 %v431_v50, %v276_v58 }
  0x57   : > { %v287_v61 = vmul.f32 %v433_v51, %v286_v59 }
  0x58   : > { %v281_v0 = vsel %vm280_vm7, %v431_v50, %v277_v60 }
  0x59   : > { %v291_v62 = vsel %vm290_vm5, %v433_v51, %v287_v61 }
  0x5a   : > { %v294_v63 = vrot.slane %v291_v62, 4 }
  0x5c   : > { %v295_v1 = vsel %vm217_vm0, %v281_v0, %v294_v63 }
  0x5d   : > { %v297_v3 = vmul.f32 %v295_v1, %v246_v28 }
  0x5f   : > { %v299_v5 = vmul.f32 %v298_v2, %v297_v3 }
  0x61   : > { %v301_v6 = vadd.f32 %v300_v4, %v299_v5 }
  0x63   : > { %302 = vst [vmem:[%s208_s26] sm:$0xff] %v301_v6 }
  0x64 PF: > { %s13_s14 = sadd.s32 1, %s456_s14   ;;  %s535_s12 = smov %s452_s13 }
  0x65   : > { %p10_p5 = scmp.ge.s32.totalorder %s13_s14, 4   ;;  %s536_s13 = smov %s538_s15 }
  0x67   :  { %12 = sbr.rel (!%p10_p5) target bundleno = 2 (0x2), region = 62 }

</bundles_post_ra>
